<compile_context>
chip_gen: v7x
topology: tpu7x:2x2x1
jax: 0.10.0
libtpu: 0.0.40
codegen_flags: <defaults>
</compile_context>

<pallas_src>
import functools

import jax
import jax.numpy as jnp
from jax.experimental import pallas as pl
from jax.experimental.pallas import tpu as pltpu

HIDDEN = 128
LANE = 128
MAX_TILE_B = 1024


def _round_up(x, m):
    return (x + m - 1) // m * m


def qnet_kernel(x_ref, w1_ref, b1_ref, w2_ref, b2_ref, w3_ref, b3_ref, o_ref, *, out_dim):
    # Fused hot path: 3 MXU matmuls (bf16 inputs, f32 accumulate) + f32 bias/ReLU epilogues.
    x = x_ref[...].astype(w1_ref.dtype)                       # (tb, in_dim) f32 -> bf16 (VPU)
    h1 = jnp.dot(x, w1_ref[...], preferred_element_type=jnp.float32) + b1_ref[...]
    h1 = jnp.maximum(h1, 0.0).astype(w2_ref.dtype)
    h2 = jnp.dot(h1, w2_ref[...], preferred_element_type=jnp.float32) + b2_ref[...]
    h2 = jnp.maximum(h2, 0.0).astype(w3_ref.dtype)
    out = jnp.dot(h2, w3_ref[...], preferred_element_type=jnp.float32) + b3_ref[...]
    # w3/b3 are zero-padded to a lane-dense N=128 for the MXU; store only the useful columns
    # (a masked 6-wide store is far cheaper than a 21x-padded f32 HBM writeback).
    o_ref[...] = out[:, :out_dim].astype(o_ref.dtype)


def prepare_params(params):
    """One-time (per weight update) pad + cast, hoisted out of the per-call forward path."""
    w1, b1 = params["w1"], params["b1"]
    w2, b2 = params["w2"], params["b2"]
    w3, b3 = params["w3"], params["b3"]
    in_dim, hidden = w1.shape
    out_dim = w3.shape[1]
    n_pad = _round_up(out_dim, LANE)

    w3_p = jnp.zeros((hidden, n_pad), jnp.bfloat16).at[:, :out_dim].set(w3.astype(jnp.bfloat16))
    b3_p = jnp.zeros((1, n_pad), jnp.float32).at[:, :out_dim].set(
        b3.reshape(1, out_dim).astype(jnp.float32))

    return {
        "w1": w1.astype(jnp.bfloat16),                     # (in_dim, 128), unpadded K
        "b1": b1.reshape(1, hidden).astype(jnp.float32),
        "w2": w2.astype(jnp.bfloat16),                     # (128, 128)
        "b2": b2.reshape(1, hidden).astype(jnp.float32),
        "w3": w3_p,                                        # (128, n_pad), zero-padded columns
        "b3": b3_p,                                        # (1, n_pad)
        "out_dim": out_dim,                                # static python int
    }


def _pick_tile_b(B):
    if B <= 512:
        return B                                   # single full-extent tile: no padding, grid=(1,)
    # Large batch: >=2 grid steps (v7x megacore), capped at 1024 rows (multiple of 16);
    # per-step work then dwarfs the ~0.35us grid-step overhead and VMEM stays at ~2-3 MiB.
    return min(MAX_TILE_B, _round_up((B + 1) // 2, 16))


def qnetwork_forward(x, prepped):
    """x: (B, in_dim) float32. prepped: output of prepare_params. Returns (B, out_dim) float32."""
    w1, b1 = prepped["w1"], prepped["b1"]
    w2, b2 = prepped["w2"], prepped["b2"]
    w3, b3 = prepped["w3"], prepped["b3"]
    out_dim = prepped["out_dim"]

    B, in_dim = x.shape
    hidden = w1.shape[1]
    n_pad = w3.shape[1]

    tile_b = _pick_tile_b(B)
    grid = (pl.cdiv(B, tile_b),)           # ragged last tile handled by Pallas partial-block masking

    const = lambda i: (0, 0)               # weights/biases: same block every step -> VMEM-resident

    flops = 2 * B * (in_dim * hidden + hidden * hidden + hidden * n_pad)
    bytes_accessed = (
        x.size * 4
        + (w1.size + w2.size + w3.size) * 2
        + (b1.size + b2.size + b3.size) * 4
        + B * out_dim * 4
    )

    return pl.pallas_call(
        functools.partial(qnet_kernel, out_dim=out_dim),
        out_shape=jax.ShapeDtypeStruct((B, out_dim), jnp.float32),
        grid=grid,
        in_specs=[
            pl.BlockSpec((tile_b, in_dim), lambda i: (i, 0)),   # x tile (pipelined, unpadded K)
            pl.BlockSpec((in_dim, hidden), const),              # w1 (resident)
            pl.BlockSpec((1, hidden), const),                   # b1
            pl.BlockSpec((hidden, hidden), const),              # w2
            pl.BlockSpec((1, hidden), const),                   # b2
            pl.BlockSpec((hidden, n_pad), const),               # w3 (padded once at init)
            pl.BlockSpec((1, n_pad), const),                    # b3
        ],
        out_specs=pl.BlockSpec((tile_b, out_dim), lambda i: (i, 0)),
        compiler_params=pltpu.CompilerParams(
            dimension_semantics=("parallel",)),                 # batch tiles across v7x TCs
        cost_estimate=pl.CostEstimate(
            flops=flops, transcendentals=0, bytes_accessed=bytes_accessed),
    )(x, w1, b1, w2, b2, w3, b3)


def init_params(key, input_dim, output_dim, hidden=HIDDEN):
    """Deterministic synthetic init (uniform, like torch Linear default scale).
    Weights stored transposed: (in, out) so the kernel computes x @ W + b."""
    ks = jax.random.split(key, 6)

    def lin(kw, kb, fan_in, fan_out):
        bound = 1.0 / jnp.sqrt(float(fan_in))
        w = jax.random.uniform(kw, (fan_in, fan_out), jnp.float32, -bound, bound)
        b = jax.random.uniform(kb, (1, fan_out), jnp.float32, -bound, bound)
        return w, b

    w1, b1 = lin(ks[0], ks[1], input_dim, hidden)
    w2, b2 = lin(ks[2], ks[3], hidden, hidden)
    w3, b3 = lin(ks[4], ks[5], hidden, output_dim)
    return {"w1": w1, "b1": b1, "w2": w2, "b2": b2, "w3": w3, "b3": b3}


def qnetwork_ref_f32(x, p):
    """Module semantics in full f32 (matches the torch QNetwork forward)."""
    h1 = jnp.maximum(x @ p["w1"] + p["b1"], 0.0)
    h2 = jnp.maximum(h1 @ p["w2"] + p["b2"], 0.0)
    return h2 @ p["w3"] + p["b3"]


def qnetwork_ref_bf16(x, p):
    """Mirror of the kernel's numerics (bf16 matmul inputs, f32 accumulate/epilogue)."""
    c = lambda a: a.astype(jnp.bfloat16).astype(jnp.float32)
    h1 = jnp.maximum(c(x) @ c(p["w1"]) + p["b1"], 0.0)
    h2 = jnp.maximum(c(h1) @ c(p["w2"]) + p["b2"], 0.0)
    return c(h2) @ c(p["w3"]) + p["b3"]


if __name__ == "__main__":
    key = jax.random.PRNGKey(0)
    k_x, k_p = jax.random.split(key)

    batch = 2
    input_dim = 4      # small state vector (simple_driving obs)
    output_dim = 6     # discrete action count

    x = jax.random.normal(k_x, (batch, input_dim), jnp.float32)
    params = init_params(k_p, input_dim, output_dim)
    prepped = prepare_params(params)   # one-time pad/cast, NOT in the per-call path

    out = jax.block_until_ready(qnetwork_forward(x, prepped))
    assert out.shape == (batch, output_dim)

    # Tight check vs a reference that mirrors the kernel's bf16/f32 numerics.
    ref_bf16 = qnetwork_ref_bf16(x, params)
    assert jnp.allclose(out, ref_bf16, atol=2e-3, rtol=2e-3), "mismatch vs bf16-mirrored reference"

    # Loose sanity check vs the full-f32 module semantics (bf16 weight/activation precision).
    ref_f32 = qnetwork_ref_f32(x, params)
    assert jnp.allclose(out, ref_f32, atol=1e-1, rtol=1e-1), "mismatch vs f32 reference"

    print("KERNEL_OK")
</pallas_src>

<mosaic_0001>
module attributes {stable_mosaic.version = 11 : i64} {
  func.func @qnet_kernel(%arg0: i32, %arg1: memref<2x4xf32, #tpu.memory_space<vmem>>, %arg2: memref<4x128xbf16, #tpu.memory_space<vmem>>, %arg3: memref<1x128xf32, #tpu.memory_space<vmem>>, %arg4: memref<128x128xbf16, #tpu.memory_space<vmem>>, %arg5: memref<1x128xf32, #tpu.memory_space<vmem>>, %arg6: memref<128x128xbf16, #tpu.memory_space<vmem>>, %arg7: memref<1x128xf32, #tpu.memory_space<vmem>>, %arg8: memref<2x6xf32, #tpu.memory_space<vmem>>) attributes {dimension_semantics = [#tpu.dimension_semantics<parallel>], iteration_bounds = array<i64: 1>, scalar_prefetch = 0 : i64, scratch_operands = 0 : i64, tpu.core_type = #tpu.core_type<tc>, window_params = [{transform_indices = @transform_0, window_bounds = array<i64: 2, 4>}, {pipeline_mode = #tpu.pipeline_mode<synchronous>, transform_indices = @transform_1, window_bounds = array<i64: 4, 128>}, {pipeline_mode = #tpu.pipeline_mode<synchronous>, transform_indices = @transform_2, window_bounds = array<i64: 1, 128>}, {pipeline_mode = #tpu.pipeline_mode<synchronous>, transform_indices = @transform_3, window_bounds = array<i64: 128, 128>}, {pipeline_mode = #tpu.pipeline_mode<synchronous>, transform_indices = @transform_4, window_bounds = array<i64: 1, 128>}, {pipeline_mode = #tpu.pipeline_mode<synchronous>, transform_indices = @transform_5, window_bounds = array<i64: 128, 128>}, {pipeline_mode = #tpu.pipeline_mode<synchronous>, transform_indices = @transform_6, window_bounds = array<i64: 1, 128>}, {transform_indices = @transform_7, window_bounds = array<i64: 2, 6>}]} {
    %c0 = arith.constant 0 : index
    %c0_0 = arith.constant 0 : index
    %0 = vector.load %arg1[%c0, %c0_0] : memref<2x4xf32, #tpu.memory_space<vmem>>, vector<2x4xf32>
    %1 = arith.truncf %0 : vector<2x4xf32> to vector<2x4xbf16>
    %c0_1 = arith.constant 0 : index
    %c0_2 = arith.constant 0 : index
    %2 = vector.load %arg2[%c0_1, %c0_2] : memref<4x128xbf16, #tpu.memory_space<vmem>>, vector<4x128xbf16>
    %cst = arith.constant dense<0.000000e+00> : vector<2x128xf32>
    %3 = tpu.matmul %1, %2, %cst {dimension_numbers = #tpu.dot_dimension_numbers<[1], [0], [0], [1], [0, 0, 1, 1], [], []>} : vector<2x4xbf16>, vector<4x128xbf16>, vector<2x128xf32> -> vector<2x128xf32>
    %c0_3 = arith.constant 0 : index
    %c0_4 = arith.constant 0 : index
    %4 = vector.load %arg3[%c0_3, %c0_4] : memref<1x128xf32, #tpu.memory_space<vmem>>, vector<1x128xf32>
    %5 = vector.broadcast %4 : vector<1x128xf32> to vector<2x128xf32>
    %6 = arith.addf %3, %5 : vector<2x128xf32>
    %cst_5 = arith.constant 0.000000e+00 : f32
    %7 = vector.broadcast %cst_5 : f32 to vector<2x128xf32>
    %8 = arith.maximumf %6, %7 : vector<2x128xf32>
    %9 = arith.truncf %8 : vector<2x128xf32> to vector<2x128xbf16>
    %c0_6 = arith.constant 0 : index
    %c0_7 = arith.constant 0 : index
    %10 = vector.load %arg4[%c0_6, %c0_7] : memref<128x128xbf16, #tpu.memory_space<vmem>>, vector<128x128xbf16>
    %cst_8 = arith.constant dense<0.000000e+00> : vector<2x128xf32>
    %11 = tpu.matmul %9, %10, %cst_8 {dimension_numbers = #tpu.dot_dimension_numbers<[1], [0], [0], [1], [0, 0, 1, 1], [], []>} : vector<2x128xbf16>, vector<128x128xbf16>, vector<2x128xf32> -> vector<2x128xf32>
    %c0_9 = arith.constant 0 : index
    %c0_10 = arith.constant 0 : index
    %12 = vector.load %arg5[%c0_9, %c0_10] : memref<1x128xf32, #tpu.memory_space<vmem>>, vector<1x128xf32>
    %13 = vector.broadcast %12 : vector<1x128xf32> to vector<2x128xf32>
    %14 = arith.addf %11, %13 : vector<2x128xf32>
    %cst_11 = arith.constant 0.000000e+00 : f32
    %15 = vector.broadcast %cst_11 : f32 to vector<2x128xf32>
    %16 = arith.maximumf %14, %15 : vector<2x128xf32>
    %17 = arith.truncf %16 : vector<2x128xf32> to vector<2x128xbf16>
    %c0_12 = arith.constant 0 : index
    %c0_13 = arith.constant 0 : index
    %18 = vector.load %arg6[%c0_12, %c0_13] : memref<128x128xbf16, #tpu.memory_space<vmem>>, vector<128x128xbf16>
    %cst_14 = arith.constant dense<0.000000e+00> : vector<2x128xf32>
    %19 = tpu.matmul %17, %18, %cst_14 {dimension_numbers = #tpu.dot_dimension_numbers<[1], [0], [0], [1], [0, 0, 1, 1], [], []>} : vector<2x128xbf16>, vector<128x128xbf16>, vector<2x128xf32> -> vector<2x128xf32>
    %c0_15 = arith.constant 0 : index
    %c0_16 = arith.constant 0 : index
    %20 = vector.load %arg7[%c0_15, %c0_16] : memref<1x128xf32, #tpu.memory_space<vmem>>, vector<1x128xf32>
    %21 = vector.broadcast %20 : vector<1x128xf32> to vector<2x128xf32>
    %22 = arith.addf %19, %21 : vector<2x128xf32>
    %23 = vector.extract_strided_slice %22 {offsets = [0, 0], sizes = [2, 6], strides = [1, 1]} : vector<2x128xf32> to vector<2x6xf32>
    %c0_17 = arith.constant 0 : index
    %c0_18 = arith.constant 0 : index
    %24 = vector.load %arg8[%c0_17, %c0_18] : memref<2x6xf32, #tpu.memory_space<vmem>>, vector<2x6xf32>
    tpu.vector_store %arg8[%c0_17, %c0_18], %23 {strides = array<i32>} : memref<2x6xf32, #tpu.memory_space<vmem>>, vector<2x6xf32>,
    return
  }
  func.func @transform_0(%arg0: i32) -> (i32, i32) {
    %c0_i32 = arith.constant 0 : i32
    %c0_i32_0 = arith.constant 0 : i32
    return %arg0, %c0_i32 : i32, i32
  }
  func.func @transform_1(%arg0: i32) -> (i32, i32) {
    %c0_i32 = arith.constant 0 : i32
    %c0_i32_0 = arith.constant 0 : i32
    %c0_i32_1 = arith.constant 0 : i32
    return %c0_i32, %c0_i32_0 : i32, i32
  }
  func.func @transform_2(%arg0: i32) -> (i32, i32) {
    %c0_i32 = arith.constant 0 : i32
    %c0_i32_0 = arith.constant 0 : i32
    %c0_i32_1 = arith.constant 0 : i32
    return %c0_i32, %c0_i32_0 : i32, i32
  }
  func.func @transform_3(%arg0: i32) -> (i32, i32) {
    %c0_i32 = arith.constant 0 : i32
    %c0_i32_0 = arith.constant 0 : i32
    %c0_i32_1 = arith.constant 0 : i32
    return %c0_i32, %c0_i32_0 : i32, i32
  }
  func.func @transform_4(%arg0: i32) -> (i32, i32) {
    %c0_i32 = arith.constant 0 : i32
    %c0_i32_0 = arith.constant 0 : i32
    %c0_i32_1 = arith.constant 0 : i32
    return %c0_i32, %c0_i32_0 : i32, i32
  }
  func.func @transform_5(%arg0: i32) -> (i32, i32) {
    %c0_i32 = arith.constant 0 : i32
    %c0_i32_0 = arith.constant 0 : i32
    %c0_i32_1 = arith.constant 0 : i32
    return %c0_i32, %c0_i32_0 : i32, i32
  }
  func.func @transform_6(%arg0: i32) -> (i32, i32) {
    %c0_i32 = arith.constant 0 : i32
    %c0_i32_0 = arith.constant 0 : i32
    %c0_i32_1 = arith.constant 0 : i32
    return %c0_i32, %c0_i32_0 : i32, i32
  }
  func.func @transform_7(%arg0: i32) -> (i32, i32) {
    %c0_i32 = arith.constant 0 : i32
    %c0_i32_0 = arith.constant 0 : i32
    return %arg0, %c0_i32 : i32, i32
  }
}

</mosaic_0001>

<bundles_post_ra>
// kernel: tpu_custom_call.1
= control target key start
LH: loop header
LB: loop body
LE: loop exit
PB: predicated region body
PF: predicated region fallthrough
CT: control target
= control target key end

     0   :  { %12 = vsyncpa [#allocation3], 0  ;;  %s710_s0 = inlined_call_operand.hbm [shape: f32[2,4], index: 0, kind: input, shape index: {}]   ;;  %s711_s1 = inlined_call_operand.vmem [shape: bf16[4,128], index: 1, kind: input, shape index: {}]   ;;  %s712_s2 = inlined_call_operand.vmem [shape: f32[1,128], index: 2, kind: input, shape index: {}]   ;;  %s713_s3 = inlined_call_operand.hbm [shape: bf16[128,128], index: 3, kind: input, shape index: {}]   ;;  %s714_s4 = inlined_call_operand.vmem [shape: f32[1,128], index: 4, kind: input, shape index: {}]   ;;  %s715_s5 = inlined_call_operand.hbm [shape: bf16[128,128], index: 5, kind: input, shape index: {}]   ;;  %s716_s6 = inlined_call_operand.vmem [shape: f32[1,128], index: 6, kind: input, shape index: {}]   ;;  %s717_s7 = inlined_call_operand.hbm [shape: f32[2,6], index: 7, kind: output, shape index: {}]  }
   0x1   :  { %13 = vsyncpa [#allocation6], 0 }
   0x2   :  { %14 = vsyncpa [#allocation4], 0  ;;  %s573_s24 = smov [#allocation5]   ;;  %s479_s28 = scalar_lea.hbm %s713_s3, 1024 }
   0x3   :  { %s34_s25 = sshll.u32 %s573_s24, 4  ;;  %p480_p0 = scmp.ne.s32.totalorder %s713_s3, %s479_s28  ;;  %s35_s25 = int_to_ptr.vmem [resolvable:$true] %s34_s25 }
   0x4   :  { %p483_p1 = scmp.lt.u32.totalorder %s479_s28, %s713_s3 }
   0x6   :  { %p485_p2 = pnand %p483_p1, %p480_p0 }
   0x8   :  { %488 = shalt.err (!%p485_p2)
}
   0x9   :  { %s489_s10 = scalar_lea.vmem %s35_s25, 1024  ;;  %p494_p4 = scmp.lt.s32.totalorder %s35_s25, %s35_s25 }
   0xa   :  { %p490_p3 = scmp.ne.s32.totalorder %s35_s25, %s489_s10  ;;  %p495_p5 = scmp.lt.s32.totalorder %s489_s10, %s489_s10 }
   0xc   :  { %p496_p6 = por %p495_p5, %p494_p4 }
   0xe   :  { %p497_p7 = pnand %p496_p6, %p490_p3 }
  0x10   :  { %500 = shalt.err (!%p497_p7)
}
  0x11   :  { %s574_s11 = smov 64   ;;  %s575_s12 = smov 4  }
  0x12   :  { %40 = dma.hbm_to_vmem [thread:$0]  %s713_s3, 1024, %s35_s25, [#allocation6], %s574_s11, %s574_s11, %s575_s12  }
  0x13   :  { %s576_s15 = smov [#allocation2]   ;;  %s577_s17 = smov [#allocation7]  }
  0x14   :  { %s21_s16 = sshll.u32 %s576_s15, 4  ;;  %s48_s18 = sshll.u32 %s577_s17, 4  ;;  %s22_s16 = int_to_ptr.vmem [resolvable:$true] %s21_s16  ;;  %s49_s18 = int_to_ptr.vmem [resolvable:$true] %s48_s18 }
  0x15   :  { %s501_s21 = scalar_lea.hbm %s710_s0, 32 }
  0x16   :  { %p502_p8 = scmp.ne.s32.totalorder %s710_s0, %s501_s21  ;;  %p505_p9 = scmp.lt.u32.totalorder %s501_s21, %s710_s0 }
  0x18   :  { %p507_p10 = pnand %p505_p9, %p502_p8 }
  0x1a   :  { %510 = shalt.err (!%p507_p10)
}
  0x1b   :  { %s511_s3 = scalar_lea.vmem %s22_s16, 32  ;;  %p516_p12 = scmp.lt.s32.totalorder %s22_s16, %s22_s16 }
  0x1c   :  { %p512_p11 = scmp.ne.s32.totalorder %s22_s16, %s511_s3  ;;  %p517_p13 = scmp.lt.s32.totalorder %s511_s3, %s511_s3 }
  0x1e   :  { %p518_p0 = por %p517_p13, %p516_p12 }
  0x20   :  { %p519_p1 = pnand %p518_p0, %p512_p11 }
  0x22   :  { %522 = shalt.err (!%p519_p1)
}
  0x23   :  { %24 = dma.hbm_to_vmem [thread:$0]  %s710_s0, 32, %s22_s16, [#allocation3]  }
  0x24   :  { %s523_s30 = scalar_lea.hbm %s715_s5, 1024 }
  0x25   :  { %p524_p2 = scmp.ne.s32.totalorder %s715_s5, %s523_s30  ;;  %p527_p3 = scmp.lt.u32.totalorder %s523_s30, %s715_s5 }
  0x27   :  { %p529_p4 = pnand %p527_p3, %p524_p2 }
  0x29   :  { %532 = shalt.err (!%p529_p4)
}
  0x2a   :  { %s533_s14 = scalar_lea.vmem %s49_s18, 1024  ;;  %p538_p6 = scmp.lt.s32.totalorder %s49_s18, %s49_s18 }
  0x2b   :  { %p534_p5 = scmp.ne.s32.totalorder %s49_s18, %s533_s14  ;;  %p539_p7 = scmp.lt.s32.totalorder %s533_s14, %s533_s14 }
  0x2d   :  { %p540_p8 = por %p539_p7, %p538_p6 }
  0x2f   :  { %p541_p9 = pnand %p540_p8, %p534_p5 }
  0x31   :  { %544 = shalt.err (!%p541_p9)
}
  0x32   :  { %54 = dma.hbm_to_vmem [thread:$0]  %s715_s5, 1024, %s49_s18, [#allocation6], %s574_s11, %s574_s11, %s575_s12  }
  0x33   :  { %567 = dma.done.wait [#allocation3], 32  }
  0x34   :  { %568 = vsyncadd [#allocation3], 4294967264 }
  0x35   :  { %569 = dma.done.wait [#allocation6], 2048  }
  0x36   :  { %570 = vsyncadd [#allocation6], 4294965248  ;;  %v578_v0 = vmov 0.0   ;;  %vm579_vm0 = vmmov 0   ;;  %vm81_vm1 = vcmask 1041408   ;;  %v463_v5 = vld [vmem:[#allocation5] sm:$0xff]  }
  0x37   :  { %409 = vmatprep.subr.bf16.mxu0 %v578_v0  ;;  %411 = vmatprep.mubr.msk.bf16.mxu0 %vm579_vm0, %v578_v0  ;;  %v69_v1 = vld [vmem:[%s711_s1] sm:$0x3]  ;;  %vm77_vm2 = vcmask 31744   ;;  %v464_v6 = vld [vmem:[#allocation5 + $0x8] sm:$0xff]   ;;  %v465_v7 = vld [vmem:[#allocation5 + $0x10] sm:$0xff]   ;;  %s580_s19 = smov [#allocation8]  }
  0x38   :  { %415 = vmatprep.subr.bf16.mxu1 %v578_v0  ;;  %431 = vmatprep.mubr.msk.bf16.mxu1 %vm579_vm0, %v578_v0  ;;  %v67_v2 = vld [vmem:[#allocation2] sm:$0x3]  ;;  %v83_v3 = vsel %vm81_vm1, %v69_v1, 0  ;;  %v467_v9 = vld [vmem:[#allocation5 + $0x20] sm:$0xff]   ;;  %v468_v10 = vld [vmem:[#allocation5 + $0x28] sm:$0xff]   ;;  %s359_s20 = sshll.u32 %s580_s19, 4  ;;  %s360_s20 = int_to_ptr.vmem [resolvable:$true] %s359_s20 }
  0x39   :  { %v68_v4 = vpack.c.bf16 %v67_v2, %v67_v2  ;;  %410 = vmatpush3.bf16.msra.mxu0 %v83_v3  ;;  %416 = vmatpush3.bf16.msra.mxu1 %v463_v5  ;;  %v466_v8 = vld [vmem:[#allocation5 + $0x18] sm:$0xff]   ;;  %v469_v11 = vld [vmem:[#allocation5 + $0x30] sm:$0xff]   ;;  %v471_v13 = vld [vmem:[#allocation7] sm:$0xff]   ;;  %vm351_vm3 = vcmask 41984   ;;  %p550_p11 = scmp.lt.s32.totalorder %s360_s20, %s360_s20 }
  0x3a   :  { %435 = vmatprep.subr.bf16.mxu0 %v578_v0  ;;  %417 = vmatprep.subr.bf16.mxu1 %v578_v0  ;;  %v470_v12 = vld [vmem:[#allocation5 + $0x38] sm:$0xff]   ;;  %v472_v14 = vld [vmem:[#allocation7 + $0x8] sm:$0xff]   ;;  %v473_v15 = vld [vmem:[#allocation7 + $0x10] sm:$0xff]  }
  0x3b   :  { %v474_v16 = vld [vmem:[#allocation7 + $0x18] sm:$0xff]   ;;  %v475_v17 = vld [vmem:[#allocation7 + $0x20] sm:$0xff]   ;;  %v476_v18 = vld [vmem:[#allocation7 + $0x28] sm:$0xff]  }
  0x3c   :  { %412 = vmatmul.mubr.msk.bf16.vlgmr.msra.gmra.mrb[0].mxu0 %vm77_vm2, %v68_v4  ;;  %v369_v19 = vld [vmem:[%s712_s2] ss:$0 sm:$0xff]  ;;  %v477_v27 = vld [vmem:[#allocation7 + $0x30] sm:$0xff]  }
  0x3d   :  { %451 = vmatprep.mubr.msk.bf16.mxu0 %vm579_vm0, %v578_v0  ;;  %418 = vmatpush3.bf16.msra.mxu1 %v464_v6  ;;  %v478_v28 = vld [vmem:[#allocation7 + $0x38] sm:$0xff]  }
  0x3e   :  { %419 = vmatprep.subr.bf16.mxu1 %v578_v0  ;;  %436 = vmatpush3.bf16.msra.mxu0 %v471_v13  ;;  %v371_v29 = vld [vmem:[%s714_s4] ss:$0 sm:$0xff]  ;;  %s545_s4 = scalar_lea.vmem %s360_s20, 32 }
  0x3f   :  { %437 = vmatprep.subr.bf16.mxu0 %v578_v0  ;;  %v380_v37 = vld [vmem:[%s716_s6] ss:$0 sm:$0xff]  ;;  %p546_p10 = scmp.ne.s32.totalorder %s360_s20, %s545_s4  ;;  %p551_p12 = scmp.lt.s32.totalorder %s545_s4, %s545_s4 }
  0x41   :  { %420 = vmatpush3.bf16.msra.mxu1 %v465_v7  ;;  %p552_p13 = por %p551_p12, %p550_p11 }
  0x42   :  { %421 = vmatprep.subr.bf16.mxu1 %v578_v0  ;;  %438 = vmatpush3.bf16.msra.mxu0 %v472_v14 }
  0x43   :  { %439 = vmatprep.subr.bf16.mxu0 %v578_v0  ;;  %p553_p0 = pnand %p552_p13, %p546_p10 }
  0x45   :  { %422 = vmatpush3.bf16.msra.mxu1 %v466_v8 }
  0x46   :  { %423 = vmatprep.subr.bf16.mxu1 %v578_v0  ;;  %440 = vmatpush3.bf16.msra.mxu0 %v473_v15 }
  0x47   :  { %441 = vmatprep.subr.bf16.mxu0 %v578_v0 }
  0x49   :  { %424 = vmatpush3.bf16.msra.mxu1 %v467_v9 }
  0x4a   :  { %425 = vmatprep.subr.bf16.mxu1 %v578_v0  ;;  %442 = vmatpush3.bf16.msra.mxu0 %v474_v16 }
  0x4b   :  { %443 = vmatprep.subr.bf16.mxu0 %v578_v0 }
  0x4d   :  { %426 = vmatpush3.bf16.msra.mxu1 %v468_v10 }
  0x4e   :  { %427 = vmatprep.subr.bf16.mxu1 %v578_v0  ;;  %444 = vmatpush3.bf16.msra.mxu0 %v475_v17 }
  0x4f   :  { %445 = vmatprep.subr.bf16.mxu0 %v578_v0 }
  0x51   :  { %428 = vmatpush3.bf16.msra.mxu1 %v469_v11 }
  0x52   :  { %429 = vmatprep.subr.bf16.mxu1 %v578_v0  ;;  %446 = vmatpush3.bf16.msra.mxu0 %v476_v18 }
  0x53   :  { %447 = vmatprep.subr.bf16.mxu0 %v578_v0 }
  0x55   :  { %430 = vmatpush3.bf16.msra.mxu1 %v470_v12 }
  0x56   :  { %448 = vmatpush3.bf16.msra.mxu0 %v477_v27 }
  0x57   :  { %449 = vmatprep.subr.bf16.mxu0 %v578_v0 }
  0x5a   :  { %450 = vmatpush3.bf16.msra.mxu0 %v478_v28 }
 0x10f   :  { %v119_v20 = vpop.f32.mrb[0].mxu0 }
 0x110   :  { %v120_v21 = vadd.f32 %v369_v19, %v119_v20  ;;  %v413_v22 = vpop.f32.mrb[1].mxu0 }
 0x111   :  { %v122_v23 = vpop.f32.mrb[2].mxu0 }
 0x112   :  { %v125_v24 = vmax.f32 %v120_v21, 0.0  ;;  %v414_v25 = vpop.f32.mrb[3].mxu0 }
 0x114   :  { %v126_v26 = vpack.c.bf16 %v125_v24, %v125_v24 }
 0x116   :  { %432 = vmatmul.mubr.bf16.vlgmr.msra.gmra.mrb[0].mxu1 %v126_v26 }
 0x1e9   :  { %v232_v30 = vpop.f32.mrb[0].mxu1 }
 0x1ea   :  { %v233_v31 = vadd.f32 %v371_v29, %v232_v30  ;;  %v433_v32 = vpop.f32.mrb[1].mxu1 }
 0x1eb   :  { %v235_v33 = vpop.f32.mrb[2].mxu1 }
 0x1ec   :  { %v238_v34 = vmax.f32 %v233_v31, 0.0  ;;  %v434_v35 = vpop.f32.mrb[3].mxu1 }
 0x1ee   :  { %v239_v36 = vpack.c.bf16 %v238_v34, %v238_v34 }
 0x1f0   :  { %452 = vmatmul.mubr.bf16.vlgmr.msra.gmra.mrb[4].mxu0 %v239_v36 }
 0x2c3   :  { %v345_v38 = vpop.f32.mrb[4].mxu0 }
 0x2c4   :  { %v346_v39 = vadd.f32 %v380_v37, %v345_v38  ;;  %v453_v40 = vpop.f32.mrb[5].mxu0 }
 0x2c5   :  { %v348_v41 = vpop.f32.mrb[6].mxu0 }
 0x2c6   :  { %v454_v42 = vpop.f32.mrb[7].mxu0  ;;  %352 = vst.msk [vmem:[#allocation8] sm:$0x3] %vm351_vm3, %v346_v39 }
 0x2c7   :  { %556 = shalt.err (!%p553_p0)
}
 0x2c8   :  { %s557_s6 = scalar_lea.hbm %s717_s7, 32 }
 0x2c9   :  { %p558_p1 = scmp.ne.s32.totalorder %s717_s7, %s557_s6  ;;  %p561_p2 = scmp.lt.u32.totalorder %s557_s6, %s717_s7 }
 0x2cb   :  { %p563_p3 = pnand %p561_p2, %p558_p1 }
 0x2cd   :  { %566 = shalt.err (!%p563_p3)
}
 0x2ce   :  { %362 = dma.vmem_to_hbm [thread:$0]  %s360_s20, 32, %s717_s7, [#allocation4]  }
 0x2cf   :  { %571 = dma.done.wait [#allocation4], 32  }
 0x2d0   :  { %572 = vsyncadd [#allocation4], 4294967264 }
 0x2d1   :  { %366 = vsyncpa [#allocation3], 1 }
 0x2d2   :  { %367 = vsyncpa [#allocation6], 1 }
 0x2d3   :  { %368 = vsyncpa [#allocation4], 1 }

</bundles_post_ra>
